<compile_context>
chip_gen: v5e
topology: v5e:2x2
jax: 0.10.0
libtpu: 0.0.40
codegen_flags: <defaults>
</compile_context>

<pallas_src>
import numpy as np
import jax
import jax.numpy as jnp
from jax.experimental import pallas as pl
from jax.experimental.pallas import tpu as pltpu

GRID_MIN, GRID_MAX = -2.0, 2.0
LN_EPS = 1e-5
BN_EPS = 1e-5

# MXU inputs cast to bf16 (f32 accumulation, f32 element-wise math).  bf16 is
# MXU-native on v5e/v6e/v7x and exact for the 0/1 adjacency / pooling matrices.
USE_BF16_MATMUL = True


# ---------------------------------------------------------------------------
# hardware queries (generation-aware tiling / VMEM budgets)
# ---------------------------------------------------------------------------
def _vmem_capacity_bytes():
    try:
        cap = getattr(pltpu.get_tpu_info(), "vmem_capacity_bytes", None)
        if cap:
            return int(cap)
    except Exception:
        pass
    return 64 << 20          # conservative fallback (v7x per-TensorCore VMEM)


def _num_tensorcores():
    try:
        kind = jax.devices()[0].device_kind.lower()
    except Exception:
        return 1
    # v7x (and v4 / v5p megacore) have 2 TensorCores per chip; v5e/v6e have 1.
    return 2 if any(t in kind for t in ("v7", "v4", "v5p")) else 1


_BUFFERED1_OK = None


def _single_buffer_supported():
    """Probe once whether pipeline_mode=pl.Buffered(1) (single-buffered invariant
    inputs) is supported by this JAX/Mosaic; otherwise fall back to the default."""
    global _BUFFERED1_OK
    if _BUFFERED1_OK is None:
        def _copy(x_ref, o_ref):
            o_ref[...] = x_ref[...]
        try:
            f = pl.pallas_call(
                _copy,
                out_shape=jax.ShapeDtypeStruct((8, 128), jnp.float32),
                grid=(2,),
                in_specs=[pl.BlockSpec((8, 128), lambda i: (0, 0),
                                       pipeline_mode=pl.Buffered(1))],
                out_specs=pl.BlockSpec((8, 128), lambda i: (0, 0)),
            )
            jax.block_until_ready(f(jnp.zeros((8, 128), jnp.float32)))
            _BUFFERED1_OK = True
        except Exception:
            _BUFFERED1_OK = False
    return _BUFFERED1_OK


def _spec(shape, index_map, pipeline_mode=None):
    if pipeline_mode is None:
        return pl.BlockSpec(shape, index_map)
    return pl.BlockSpec(shape, index_map, pipeline_mode=pipeline_mode)


# ---------------------------------------------------------------------------
# VMEM-budget-aware tile planning
# ---------------------------------------------------------------------------
def _plan_tiles(m, k, din0, dout, max_basis_cols, max_dim, mat_bytes,
                params_bytes, single_buf, force_tk=None):
    cap = _vmem_capacity_bytes()
    # Leave headroom under the physical per-core VMEM (v7x: 64 MiB; v5e/v6e: 128 MiB).
    vmem_limit = max(32 << 20, min(int(cap * 0.70), 112 << 20))
    param_mult = 1 if single_buf else 2
    budget = max(4 << 20, int(vmem_limit * 0.85) - param_mult * params_bytes)

    def footprint(tm_, tk_):
        nk_ = -(-k // tk_)
        x_mult = param_mult if nk_ == 1 else 2
        work_cols = max_basis_cols + 4 * max(max_dim, 128)
        return (2 * tm_ * tk_ * mat_bytes      # (tm, tk) mat stripe, double-buffered
                + x_mult * tk_ * din0 * 4      # (tk, din0) x block
                + 2 * tm_ * dout * 4           # (tm, dout) out tile, double-buffered
                + tm_ * din0 * 4               # f32 accumulator scratch
                + tm_ * work_cols * 4)         # RBF basis / temporaries work area

    # --- contraction (K) tile: must divide k and be a multiple of 128 unless tk == k.
    if force_tk is not None and force_tk != k:
        assert k % force_tk == 0 and force_tk % 128 == 0
        tk = force_tk
    else:
        tk = k
        if k > 128 and k % 128 == 0 and footprint(8, k) > budget:
            tk = 128                                   # minimum-tile fallback
            largest = ((k - 128) // 128) * 128
            for c in range(largest, 0, -128):
                if k % c == 0 and footprint(8, c) <= budget:
                    tk = c
                    break

    # --- row (M) tile: cdiv grid, partial last tile is write-masked.
    cores = _num_tensorcores()
    max_rows = 256 if cores > 1 else 1024
    if m <= 8:
        tm = m
    else:
        cap_rows = max(8, min(max_rows, (m // 8) * 8))
        if cores > 1 and m >= 16:
            half = -(-m // 2)                          # prefer >= 2 steps (megacore)
            cap_rows = min(cap_rows, max(8, ((half + 7) // 8) * 8))
        tm = cap_rows
        while tm > 8 and footprint(tm, tk) > budget:
            tm -= 8
    return tm, tk, vmem_limit


# ---------------------------------------------------------------------------
# fused kernel:  out[tile] = FastKAN_L(...FastKAN_1( mat[tile] @ x ))  (+ log_softmax)
# ---------------------------------------------------------------------------
def _fastkan_sublayer(h, gamma, beta, grid_vec, sw, bw, bb, inv_denom, mxu_dtype):
    # LayerNorm over the feature axis (f32).
    mean = jnp.mean(h, axis=-1, keepdims=True)
    var = jnp.mean(jnp.square(h - mean), axis=-1, keepdims=True)
    xn = (h - mean) * jax.lax.rsqrt(var + LN_EPS)
    xn = xn * gamma + beta
    # RBF basis, lane-dense in the flattened (g*Din + d) layout; 1/denominator is
    # pre-folded into z and grid_vec so the inner expression is sub+mul+square.
    z = xn * inv_denom                                         # (tm, Din)
    g = grid_vec.shape[-1] // h.shape[-1]
    basis = jnp.exp(-jnp.square(
        jnp.concatenate([z] * g, axis=-1) - grid_vec))         # (tm, Din*G)
    # Single K = Din*G MXU matmul replaces G small K = Din dots (bf16 in, f32 acc).
    y = jnp.dot(basis.astype(mxu_dtype), sw.astype(mxu_dtype),
                preferred_element_type=jnp.float32)
    y = y + jnp.dot(jax.nn.silu(h).astype(mxu_dtype), bw.astype(mxu_dtype),
                    preferred_element_type=jnp.float32)
    return y + bb


def _make_fused_kernel(num_sublayers, inv_denom, log_softmax_out, mxu_dtype):
    def kernel(mat_ref, x_ref, *refs):
        acc_ref = refs[-1]          # (tm, din0) f32 scratch accumulator
        o_ref = refs[-2]
        params = refs[:-2]
        kk = pl.program_id(1)

        @pl.when(kk == 0)
        def _init():
            acc_ref[...] = jnp.zeros_like(acc_ref)

        # Row-tile matmul: GIN aggregation (I + A) @ x, or global_add_pool P @ x.
        acc_ref[...] += jnp.dot(mat_ref[...].astype(mxu_dtype),
                                x_ref[...].astype(mxu_dtype),
                                preferred_element_type=jnp.float32)

        @pl.when(kk == pl.num_programs(1) - 1)
        def _finalize():
            h = acc_ref[...]
            for l in range(num_sublayers):
                gamma, beta, gv, sw, bw, bb = (r[...] for r in params[6 * l:6 * l + 6])
                h = _fastkan_sublayer(h, gamma, beta, gv, sw, bw, bb,
                                      inv_denom, mxu_dtype)
            if log_softmax_out:
                h = h - jnp.max(h, axis=-1, keepdims=True)
                h = h - jnp.log(jnp.sum(jnp.exp(h), axis=-1, keepdims=True))
            o_ref[...] = h.astype(o_ref.dtype)
    return kernel


_PARAM_KEYS = ("ln_gamma", "ln_beta", "grid_vec", "spline_w", "base_w", "base_b")


def fused_block(mat, x, sublayers, inv_denom, *, log_softmax_out=False, force_tk=None):
    m, k = mat.shape
    assert x.shape[0] == k
    din0 = x.shape[1]
    dout = sublayers[-1]["base_b"].shape[-1]
    mat_bytes = mat.dtype.itemsize

    params_bytes = sum(int(p[name].size) * p[name].dtype.itemsize
                       for p in sublayers for name in _PARAM_KEYS)
    max_basis = max(int(p["grid_vec"].shape[-1]) for p in sublayers)
    max_dim = max([din0] + [int(p["base_b"].shape[-1]) for p in sublayers])

    single_buf = _single_buffer_supported()
    tm, tk, vmem_limit = _plan_tiles(m, k, din0, dout, max_basis, max_dim,
                                     mat_bytes, params_bytes, single_buf, force_tk)
    nm = -(-m // tm)
    nk = -(-k // tk)
    assert k % tk == 0, "contraction tile must divide K exactly"

    inv_pm = pl.Buffered(1) if single_buf else None        # single-buffer invariants
    x_pm = inv_pm if nk == 1 else None                     # x varies along k when tiled

    in_specs = [_spec((tm, tk), lambda i, kk: (i, kk)),
                _spec((tk, din0), lambda i, kk: (kk, 0), x_pm)]
    args = [mat, x]
    for p in sublayers:
        for name in _PARAM_KEYS:
            in_specs.append(_spec(p[name].shape, lambda i, kk: (0, 0), inv_pm))
            args.append(p[name])

    mxu_dtype = jnp.bfloat16 if USE_BF16_MATMUL else jnp.float32
    kernel = _make_fused_kernel(len(sublayers), inv_denom, log_softmax_out, mxu_dtype)

    # Advisory cost estimate (lets XLA schedule neighbours around the custom call).
    flops = 2 * m * k * din0
    trans = 0
    d_in = din0
    for p in sublayers:
        d_out_l = int(p["base_b"].shape[-1])
        gcols = int(p["grid_vec"].shape[-1])
        flops += 2 * m * gcols * d_out_l + 2 * m * d_in * d_out_l
        trans += m * gcols + m * d_in
        d_in = d_out_l
    bytes_accessed = m * k * mat_bytes + k * din0 * 4 + m * dout * 4 + params_bytes

    return pl.pallas_call(
        kernel,
        out_shape=jax.ShapeDtypeStruct((m, dout), jnp.float32),
        grid=(nm, nk),
        in_specs=in_specs,
        out_specs=pl.BlockSpec((tm, dout), lambda i, kk: (i, 0)),
        scratch_shapes=[pltpu.VMEM((tm, din0), jnp.float32)],
        compiler_params=pltpu.CompilerParams(
            dimension_semantics=("parallel", "arbitrary"),
            vmem_limit_bytes=int(vmem_limit),
        ),
        cost_estimate=pl.CostEstimate(flops=int(flops), transcendentals=int(trans),
                                      bytes_accessed=int(bytes_accessed)),
    )(*args)


# ---------------------------------------------------------------------------
# parameters (deterministic, synthetic)
# ---------------------------------------------------------------------------
def init_fastkan_sublayer(key, din, dout, num_grids):
    k1, k2 = jax.random.split(key)
    grid_pts = jnp.linspace(GRID_MIN, GRID_MAX, num_grids)
    inv_denom = (num_grids - 1) / (GRID_MAX - GRID_MIN)
    # grid_vec is pre-scaled by 1/denominator and laid out g-major (index g*Din+d),
    # matching the concatenate([z]*G) flattening inside the kernel.
    grid_vec = jnp.repeat(grid_pts * inv_denom, din)[None, :].astype(jnp.float32)
    return {
        "ln_gamma": jnp.ones((1, din), jnp.float32),
        "ln_beta": jnp.zeros((1, din), jnp.float32),
        "grid_vec": grid_vec,
        # Flattened (G*Din, Dout) spline weight, g-major.  To import a PyTorch
        # SplineLinear weight W of shape (Dout, Din*G) (d-major flattening):
        #   W.reshape(Dout, Din, G).permute(2, 1, 0).reshape(G*Din, Dout).
        "spline_w": jax.random.normal(k1, (num_grids * din, dout), jnp.float32)
                    * (0.1 / (din * num_grids) ** 0.5),
        "base_w": jax.random.normal(k2, (din, dout), jnp.float32) * (1.0 / din ** 0.5),
        "base_b": jnp.zeros((1, dout), jnp.float32),
    }


def make_fastkan_params(key, num_features, hidden_dim, out_dim, hidden_layers, G):
    sizes = [num_features] + [hidden_dim] * (hidden_layers - 1) + [out_dim]
    layers = []
    for din, dout in zip(sizes[:-1], sizes[1:]):
        key, sub = jax.random.split(key)
        layers.append(init_fastkan_sublayer(sub, din, dout, G))
    return key, layers


def init_fastkagin(key, gnn_layers, num_features, hidden_dim, num_classes,
                   hidden_layers, grid_size):
    convs, bns = [], []
    key, c0 = make_fastkan_params(key, num_features, hidden_dim, hidden_dim,
                                  hidden_layers, grid_size)
    convs.append(c0)
    for _ in range(gnn_layers - 1):
        key, ci = make_fastkan_params(key, hidden_dim, hidden_dim, hidden_dim,
                                      hidden_layers, grid_size)
        convs.append(ci)
    for _ in range(gnn_layers):
        bns.append({"gamma": jnp.ones((1, hidden_dim), jnp.float32),
                    "beta": jnp.zeros((1, hidden_dim), jnp.float32),
                    "mean": jnp.zeros((1, hidden_dim), jnp.float32),
                    "var": jnp.ones((1, hidden_dim), jnp.float32)})
    key, kan = make_fastkan_params(key, hidden_dim, hidden_dim, num_classes,
                                   hidden_layers, grid_size)
    return {"convs": convs, "bns": bns, "kan": kan}


def fold_bn_into_last_sublayer(sublayers, bn):
    """Eval-mode BatchNorm1d is a per-channel affine; fold it into the preceding
    FastKAN sub-layer's output weights/bias (removes one kernel + one HBM round trip
    per GNN layer)."""
    inv = jax.lax.rsqrt(bn["var"] + BN_EPS)
    scale = bn["gamma"] * inv                       # (1, C)
    shift = bn["beta"] - bn["mean"] * scale         # (1, C)
    last = dict(sublayers[-1])
    last["spline_w"] = last["spline_w"] * scale
    last["base_w"] = last["base_w"] * scale
    last["base_b"] = last["base_b"] * scale + shift
    return sublayers[:-1] + [last]


# ---------------------------------------------------------------------------
# full forward pass
# ---------------------------------------------------------------------------
def fastkagin_forward(x, a_hat, pool_mat, params, grid_size, force_tk=None):
    inv_denom = (grid_size - 1) / (GRID_MAX - GRID_MIN)

    def _tk(kdim):
        if force_tk and force_tk % 128 == 0 and kdim % force_tk == 0 and kdim > force_tk:
            return force_tk
        return None

    for conv_p, bn_p in zip(params["convs"], params["bns"]):
        layers = fold_bn_into_last_sublayer(conv_p, bn_p)
        # GIN aggregation + FastKAN MLP + (folded) BatchNorm — one fused kernel.
        x = fused_block(a_hat, x, layers, inv_denom, force_tk=_tk(a_hat.shape[1]))
        # TODO(synk): dropout in eval mode -> identity
    # global_add_pool + classifier FastKAN + log_softmax — one fused kernel.
    return fused_block(pool_mat, x, params["kan"], inv_denom,
                       log_softmax_out=True, force_tk=_tk(pool_mat.shape[1]))


# ---------------------------------------------------------------------------
# synthetic batched ring graphs
# ---------------------------------------------------------------------------
def make_ring_batch(n_graphs, n_per, num_features, key):
    N = n_graphs * n_per
    A = np.zeros((N, N), np.float32)
    for g in range(n_graphs):
        off = g * n_per
        for v in range(n_per):
            u, w = off + v, off + (v + 1) % n_per
            A[u, w] = 1.0
            A[w, u] = 1.0
    # (I + A) aggregation matrix (GIN, eps = 0) and global_add_pool matrix, stored
    # bf16 (0/1 entries are exact) to halve the dominant O(N^2) HBM/VMEM traffic.
    a_hat = jnp.asarray(A + np.eye(N, dtype=np.float32), dtype=jnp.bfloat16)
    pool = np.zeros((n_graphs, N), np.float32)
    for g in range(n_graphs):
        pool[g, g * n_per:(g + 1) * n_per] = 1.0
    pool_mat = jnp.asarray(pool, dtype=jnp.bfloat16)
    x = jax.random.normal(key, (N, num_features), jnp.float32)
    return a_hat, pool_mat, x


if __name__ == "__main__":
    # hyperparameters (small, consistent with the module signature)
    gnn_layers, num_features, hidden_dim, num_classes = 2, 4, 32, 3
    hidden_layers, grid_size = 2, 8

    key = jax.random.PRNGKey(0)
    key, k_small, k_med = jax.random.split(key, 3)
    params = init_fastkagin(key, gnn_layers, num_features, hidden_dim,
                            num_classes, hidden_layers, grid_size)

    # --- primary small test: 2 ring graphs of 8 nodes each ------------------
    a_hat, pool_mat, x = make_ring_batch(2, 8, num_features, k_small)
    out = fastkagin_forward(x, a_hat, pool_mat, params, grid_size)
    out = jax.block_until_ready(out)
    assert out.shape == (2, num_classes)
    assert bool(jnp.all(jnp.isfinite(out)))
    assert bool(jnp.allclose(jnp.sum(jnp.exp(out), axis=1), 1.0, atol=1e-4))

    # --- scalability check: exercises the K-tiled (multi-step contraction) path
    a_hat_m, pool_m, x_m = make_ring_batch(32, 8, num_features, k_med)   # N = 256
    out_m = fastkagin_forward(x_m, a_hat_m, pool_m, params, grid_size, force_tk=128)
    out_m = jax.block_until_ready(out_m)
    assert out_m.shape == (32, num_classes)
    assert bool(jnp.all(jnp.isfinite(out_m)))
    assert bool(jnp.allclose(jnp.sum(jnp.exp(out_m), axis=1), 1.0, atol=1e-4))

    print("KERNEL_OK")
</pallas_src>

<mosaic_0001>
module attributes {stable_mosaic.version = 11 : i64} {
  func.func @_copy(%arg0: i32, %arg1: memref<8x128xf32, #tpu.memory_space<vmem>>, %arg2: memref<8x128xf32, #tpu.memory_space<vmem>>) attributes {dimension_semantics = [#tpu.dimension_semantics<arbitrary>], iteration_bounds = array<i64: 2>, scalar_prefetch = 0 : i64, scratch_operands = 0 : i64, tpu.core_type = #tpu.core_type<tc>, window_params = [{pipeline_mode = #tpu.pipeline_mode<synchronous>, transform_indices = @transform_0, window_bounds = array<i64: 8, 128>}, {pipeline_mode = #tpu.pipeline_mode<synchronous>, transform_indices = @transform_1, window_bounds = array<i64: 8, 128>}]} {
    %c0 = arith.constant 0 : index
    %c0_0 = arith.constant 0 : index
    %0 = vector.load %arg1[%c0, %c0_0] : memref<8x128xf32, #tpu.memory_space<vmem>>, vector<8x128xf32>
    %c0_1 = arith.constant 0 : index
    %c0_2 = arith.constant 0 : index
    %1 = vector.load %arg2[%c0_1, %c0_2] : memref<8x128xf32, #tpu.memory_space<vmem>>, vector<8x128xf32>
    tpu.vector_store %arg2[%c0_1, %c0_2], %0 {strides = array<i32>} : memref<8x128xf32, #tpu.memory_space<vmem>>, vector<8x128xf32>,
    return
  }
  func.func @transform_0(%arg0: i32) -> (i32, i32) {
    %c0_i32 = arith.constant 0 : i32
    %c0_i32_0 = arith.constant 0 : i32
    %c0_i32_1 = arith.constant 0 : i32
    return %c0_i32, %c0_i32_0 : i32, i32
  }
  func.func @transform_1(%arg0: i32) -> (i32, i32) {
    %c0_i32 = arith.constant 0 : i32
    %c0_i32_0 = arith.constant 0 : i32
    %c0_i32_1 = arith.constant 0 : i32
    return %c0_i32, %c0_i32_0 : i32, i32
  }
}

module attributes {stable_mosaic.version = 11 : i64} {
  func.func @kernel(%arg0: i32, %arg1: i32, %arg2: memref<16x16xbf16, #tpu.memory_space<vmem>>, %arg3: memref<16x4xf32, #tpu.memory_space<vmem>>, %arg4: memref<1x4xf32, #tpu.memory_space<vmem>>, %arg5: memref<1x4xf32, #tpu.memory_space<vmem>>, %arg6: memref<1x32xf32, #tpu.memory_space<vmem>>, %arg7: memref<32x32xf32, #tpu.memory_space<vmem>>, %arg8: memref<4x32xf32, #tpu.memory_space<vmem>>, %arg9: memref<1x32xf32, #tpu.memory_space<vmem>>, %arg10: memref<1x32xf32, #tpu.memory_space<vmem>>, %arg11: memref<1x32xf32, #tpu.memory_space<vmem>>, %arg12: memref<1x256xf32, #tpu.memory_space<vmem>>, %arg13: memref<256x32xf32, #tpu.memory_space<vmem>>, %arg14: memref<32x32xf32, #tpu.memory_space<vmem>>, %arg15: memref<1x32xf32, #tpu.memory_space<vmem>>, %arg16: memref<16x32xf32, #tpu.memory_space<vmem>>, %arg17: memref<16x4xf32, #tpu.memory_space<vmem>>) attributes {dimension_semantics = [#tpu.dimension_semantics<parallel>, #tpu.dimension_semantics<arbitrary>], iteration_bounds = array<i64: 1, 1>, scalar_prefetch = 0 : i64, scratch_operands = 1 : i64, tpu.core_type = #tpu.core_type<tc>, window_params = [{transform_indices = @transform_0, window_bounds = array<i64: 16, 16>}, {transform_indices = @transform_1, window_bounds = array<i64: 16, 4>}, {pipeline_mode = #tpu.pipeline_mode<synchronous>, transform_indices = @transform_2, window_bounds = array<i64: 1, 4>}, {pipeline_mode = #tpu.pipeline_mode<synchronous>, transform_indices = @transform_3, window_bounds = array<i64: 1, 4>}, {pipeline_mode = #tpu.pipeline_mode<synchronous>, transform_indices = @transform_4, window_bounds = array<i64: 1, 32>}, {pipeline_mode = #tpu.pipeline_mode<synchronous>, transform_indices = @transform_5, window_bounds = array<i64: 32, 32>}, {pipeline_mode = #tpu.pipeline_mode<synchronous>, transform_indices = @transform_6, window_bounds = array<i64: 4, 32>}, {pipeline_mode = #tpu.pipeline_mode<synchronous>, transform_indices = @transform_7, window_bounds = array<i64: 1, 32>}, {pipeline_mode = #tpu.pipeline_mode<synchronous>, transform_indices = @transform_8, window_bounds = array<i64: 1, 32>}, {pipeline_mode = #tpu.pipeline_mode<synchronous>, transform_indices = @transform_9, window_bounds = array<i64: 1, 32>}, {pipeline_mode = #tpu.pipeline_mode<synchronous>, transform_indices = @transform_10, window_bounds = array<i64: 1, 256>}, {pipeline_mode = #tpu.pipeline_mode<synchronous>, transform_indices = @transform_11, window_bounds = array<i64: 256, 32>}, {pipeline_mode = #tpu.pipeline_mode<synchronous>, transform_indices = @transform_12, window_bounds = array<i64: 32, 32>}, {pipeline_mode = #tpu.pipeline_mode<synchronous>, transform_indices = @transform_13, window_bounds = array<i64: 1, 32>}, {transform_indices = @transform_14, window_bounds = array<i64: 16, 32>}]} {
    %c0_i32 = arith.constant 0 : i32
    %0 = arith.cmpi eq, %arg1, %c0_i32 : i32
    %1 = arith.extui %0 : i1 to i32
    %c0_i32_0 = arith.constant 0 : i32
    %2 = arith.cmpi ne, %1, %c0_i32_0 : i32
    scf.if %2 {
      %cst_10 = arith.constant 0.000000e+00 : f32
      %13 = vector.broadcast %cst_10 : f32 to vector<16x4xf32>
      %c0_11 = arith.constant 0 : index
      %c0_12 = arith.constant 0 : index
      %14 = vector.load %arg17[%c0_11, %c0_12] : memref<16x4xf32, #tpu.memory_space<vmem>>, vector<16x4xf32>
      tpu.vector_store %arg17[%c0_11, %c0_12], %13 {strides = array<i32>} : memref<16x4xf32, #tpu.memory_space<vmem>>, vector<16x4xf32>,
    } else {
    }
    %c0 = arith.constant 0 : index
    %c0_1 = arith.constant 0 : index
    %3 = vector.load %arg17[%c0, %c0_1] : memref<16x4xf32, #tpu.memory_space<vmem>>, vector<16x4xf32>
    %c0_2 = arith.constant 0 : index
    %c0_3 = arith.constant 0 : index
    %4 = vector.load %arg2[%c0_2, %c0_3] : memref<16x16xbf16, #tpu.memory_space<vmem>>, vector<16x16xbf16>
    %c0_4 = arith.constant 0 : index
    %c0_5 = arith.constant 0 : index
    %5 = vector.load %arg3[%c0_4, %c0_5] : memref<16x4xf32, #tpu.memory_space<vmem>>, vector<16x4xf32>
    %6 = arith.truncf %5 : vector<16x4xf32> to vector<16x4xbf16>
    %cst = arith.constant dense<0.000000e+00> : vector<16x4xf32>
    %7 = tpu.matmul %4, %6, %cst {dimension_numbers = #tpu.dot_dimension_numbers<[1], [0], [0], [1], [0, 0, 1, 1], [], []>} : vector<16x16xbf16>, vector<16x4xbf16>, vector<16x4xf32> -> vector<16x4xf32>
    %8 = arith.addf %3, %7 : vector<16x4xf32>
    %c0_6 = arith.constant 0 : index
    %c0_7 = arith.constant 0 : index
    %9 = vector.load %arg17[%c0_6, %c0_7] : memref<16x4xf32, #tpu.memory_space<vmem>>, vector<16x4xf32>
    tpu.vector_store %arg17[%c0_6, %c0_7], %8 {strides = array<i32>} : memref<16x4xf32, #tpu.memory_space<vmem>>, vector<16x4xf32>,
    %c0_i32_8 = arith.constant 0 : i32
    %10 = arith.cmpi eq, %arg1, %c0_i32_8 : i32
    %11 = arith.extui %10 : i1 to i32
    %c0_i32_9 = arith.constant 0 : i32
    %12 = arith.cmpi ne, %11, %c0_i32_9 : i32
    scf.if %12 {
      %c0_10 = arith.constant 0 : index
      %c0_11 = arith.constant 0 : index
      %13 = vector.load %arg17[%c0_10, %c0_11] : memref<16x4xf32, #tpu.memory_space<vmem>>, vector<16x4xf32>
      %c0_12 = arith.constant 0 : index
      %c0_13 = arith.constant 0 : index
      %14 = vector.load %arg4[%c0_12, %c0_13] : memref<1x4xf32, #tpu.memory_space<vmem>>, vector<1x4xf32>
      %c0_14 = arith.constant 0 : index
      %c0_15 = arith.constant 0 : index
      %15 = vector.load %arg5[%c0_14, %c0_15] : memref<1x4xf32, #tpu.memory_space<vmem>>, vector<1x4xf32>
      %c0_16 = arith.constant 0 : index
      %c0_17 = arith.constant 0 : index
      %16 = vector.load %arg6[%c0_16, %c0_17] : memref<1x32xf32, #tpu.memory_space<vmem>>, vector<1x32xf32>
      %c0_18 = arith.constant 0 : index
      %c0_19 = arith.constant 0 : index
      %17 = vector.load %arg7[%c0_18, %c0_19] : memref<32x32xf32, #tpu.memory_space<vmem>>, vector<32x32xf32>
      %c0_20 = arith.constant 0 : index
      %c0_21 = arith.constant 0 : index
      %18 = vector.load %arg8[%c0_20, %c0_21] : memref<4x32xf32, #tpu.memory_space<vmem>>, vector<4x32xf32>
      %c0_22 = arith.constant 0 : index
      %c0_23 = arith.constant 0 : index
      %19 = vector.load %arg9[%c0_22, %c0_23] : memref<1x32xf32, #tpu.memory_space<vmem>>, vector<1x32xf32>
      %cst_24 = arith.constant dense<0.000000e+00> : vector<16xf32>
      %20 = vector.multi_reduction <add>, %13, %cst_24 [1] : vector<16x4xf32> to vector<16xf32>
      %21 = vector.shape_cast %20 : vector<16xf32> to vector<16x1xf32>
      %cst_25 = arith.constant 4.000000e+00 : f32
      %22 = vector.broadcast %cst_25 : f32 to vector<16x1xf32>
      %23 = arith.divf %21, %22 : vector<16x1xf32>
      %24 = vector.broadcast %23 : vector<16x1xf32> to vector<16x4xf32>
      %25 = arith.subf %13, %24 : vector<16x4xf32>
      %26 = arith.mulf %25, %25 : vector<16x4xf32>
      %cst_26 = arith.constant dense<0.000000e+00> : vector<16xf32>
      %27 = vector.multi_reduction <add>, %26, %cst_26 [1] : vector<16x4xf32> to vector<16xf32>
      %28 = vector.shape_cast %27 : vector<16xf32> to vector<16x1xf32>
      %cst_27 = arith.constant 4.000000e+00 : f32
      %29 = vector.broadcast %cst_27 : f32 to vector<16x1xf32>
      %30 = arith.divf %28, %29 : vector<16x1xf32>
      %31 = vector.broadcast %23 : vector<16x1xf32> to vector<16x4xf32>
      %32 = arith.subf %13, %31 : vector<16x4xf32>
      %cst_28 = arith.constant 9.99999974E-6 : f32
      %33 = vector.broadcast %cst_28 : f32 to vector<16x1xf32>
      %34 = arith.addf %30, %33 : vector<16x1xf32>
      %35 = math.rsqrt %34 : vector<16x1xf32>
      %36 = vector.broadcast %35 : vector<16x1xf32> to vector<16x4xf32>
      %37 = arith.mulf %32, %36 : vector<16x4xf32>
      %38 = vector.broadcast %14 : vector<1x4xf32> to vector<16x4xf32>
      %39 = arith.mulf %37, %38 : vector<16x4xf32>
      %40 = vector.broadcast %15 : vector<1x4xf32> to vector<16x4xf32>
      %41 = arith.addf %39, %40 : vector<16x4xf32>
      %cst_29 = arith.constant 1.750000e+00 : f32
      %42 = vector.broadcast %cst_29 : f32 to vector<16x4xf32>
      %43 = arith.mulf %41, %42 : vector<16x4xf32>
      %44 = tpu.concatenate %43, %43, %43, %43, %43, %43, %43, %43 in 1 : vector<16x4xf32>, vector<16x4xf32>, vector<16x4xf32>, vector<16x4xf32>, vector<16x4xf32>, vector<16x4xf32>, vector<16x4xf32>, vector<16x4xf32> -> vector<16x32xf32>
      %45 = vector.broadcast %16 : vector<1x32xf32> to vector<16x32xf32>
      %46 = arith.subf %44, %45 : vector<16x32xf32>
      %47 = arith.mulf %46, %46 : vector<16x32xf32>
      %cst_30 = arith.constant 0.000000e+00 : f32
      %48 = vector.broadcast %cst_30 : f32 to vector<16x32xf32>
      %49 = arith.subf %48, %47 : vector<16x32xf32>
      %50 = math.exp %49 : vector<16x32xf32>
      %51 = arith.truncf %50 : vector<16x32xf32> to vector<16x32xbf16>
      %52 = arith.truncf %17 : vector<32x32xf32> to vector<32x32xbf16>
      %cst_31 = arith.constant dense<0.000000e+00> : vector<16x32xf32>
      %53 = tpu.matmul %51, %52, %cst_31 {dimension_numbers = #tpu.dot_dimension_numbers<[1], [0], [0], [1], [0, 0, 1, 1], [], []>} : vector<16x32xbf16>, vector<32x32xbf16>, vector<16x32xf32> -> vector<16x32xf32>
      %54 = arith.negf %13 : vector<16x4xf32>
      %55 = math.exp %54 : vector<16x4xf32>
      %cst_32 = arith.constant 1.000000e+00 : f32
      %56 = vector.broadcast %cst_32 : f32 to vector<16x4xf32>
      %57 = arith.addf %56, %55 : vector<16x4xf32>
      %58 = arith.divf %56, %57 : vector<16x4xf32>
      %59 = arith.mulf %13, %58 : vector<16x4xf32>
      %60 = arith.truncf %59 : vector<16x4xf32> to vector<16x4xbf16>
      %61 = arith.truncf %18 : vector<4x32xf32> to vector<4x32xbf16>
      %cst_33 = arith.constant dense<0.000000e+00> : vector<16x32xf32>
      %62 = tpu.matmul %60, %61, %cst_33 {dimension_numbers = #tpu.dot_dimension_numbers<[1], [0], [0], [1], [0, 0, 1, 1], [], []>} : vector<16x4xbf16>, vector<4x32xbf16>, vector<16x32xf32> -> vector<16x32xf32>
      %63 = arith.addf %53, %62 : vector<16x32xf32>
      %64 = vector.broadcast %19 : vector<1x32xf32> to vector<16x32xf32>
      %65 = arith.addf %63, %64 : vector<16x32xf32>
      %c0_34 = arith.constant 0 : index
      %c0_35 = arith.constant 0 : index
      %66 = vector.load %arg10[%c0_34, %c0_35] : memref<1x32xf32, #tpu.memory_space<vmem>>, vector<1x32xf32>
      %c0_36 = arith.constant 0 : index
      %c0_37 = arith.constant 0 : index
      %67 = vector.load %arg11[%c0_36, %c0_37] : memref<1x32xf32, #tpu.memory_space<vmem>>, vector<1x32xf32>
      %c0_38 = arith.constant 0 : index
      %c0_39 = arith.constant 0 : index
      %68 = vector.load %arg12[%c0_38, %c0_39] : memref<1x256xf32, #tpu.memory_space<vmem>>, vector<1x256xf32>
      %c0_40 = arith.constant 0 : index
      %c0_41 = arith.constant 0 : index
      %69 = vector.load %arg13[%c0_40, %c0_41] : memref<256x32xf32, #tpu.memory_space<vmem>>, vector<256x32xf32>
      %c0_42 = arith.constant 0 : index
      %c0_43 = arith.constant 0 : index
      %70 = vector.load %arg14[%c0_42, %c0_43] : memref<32x32xf32, #tpu.memory_space<vmem>>, vector<32x32xf32>
      %c0_44 = arith.constant 0 : index
      %c0_45 = arith.constant 0 : index
      %71 = vector.load %arg15[%c0_44, %c0_45] : memref<1x32xf32, #tpu.memory_space<vmem>>, vector<1x32xf32>
      %cst_46 = arith.constant dense<0.000000e+00> : vector<16xf32>
      %72 = vector.multi_reduction <add>, %65, %cst_46 [1] : vector<16x32xf32> to vector<16xf32>
      %73 = vector.shape_cast %72 : vector<16xf32> to vector<16x1xf32>
      %cst_47 = arith.constant 3.200000e+01 : f32
      %74 = vector.broadcast %cst_47 : f32 to vector<16x1xf32>
      %75 = arith.divf %73, %74 : vector<16x1xf32>
      %76 = vector.broadcast %75 : vector<16x1xf32> to vector<16x32xf32>
      %77 = arith.subf %65, %76 : vector<16x32xf32>
      %78 = arith.mulf %77, %77 : vector<16x32xf32>
      %cst_48 = arith.constant dense<0.000000e+00> : vector<16xf32>
      %79 = vector.multi_reduction <add>, %78, %cst_48 [1] : vector<16x32xf32> to vector<16xf32>
      %80 = vector.shape_cast %79 : vector<16xf32> to vector<16x1xf32>
      %cst_49 = arith.constant 3.200000e+01 : f32
      %81 = vector.broadcast %cst_49 : f32 to vector<16x1xf32>
      %82 = arith.divf %80, %81 : vector<16x1xf32>
      %83 = vector.broadcast %75 : vector<16x1xf32> to vector<16x32xf32>
      %84 = arith.subf %65, %83 : vector<16x32xf32>
      %cst_50 = arith.constant 9.99999974E-6 : f32
      %85 = vector.broadcast %cst_50 : f32 to vector<16x1xf32>
      %86 = arith.addf %82, %85 : vector<16x1xf32>
      %87 = math.rsqrt %86 : vector<16x1xf32>
      %88 = vector.broadcast %87 : vector<16x1xf32> to vector<16x32xf32>
      %89 = arith.mulf %84, %88 : vector<16x32xf32>
      %90 = vector.broadcast %66 : vector<1x32xf32> to vector<16x32xf32>
      %91 = arith.mulf %89, %90 : vector<16x32xf32>
      %92 = vector.broadcast %67 : vector<1x32xf32> to vector<16x32xf32>
      %93 = arith.addf %91, %92 : vector<16x32xf32>
      %cst_51 = arith.constant 1.750000e+00 : f32
      %94 = vector.broadcast %cst_51 : f32 to vector<16x32xf32>
      %95 = arith.mulf %93, %94 : vector<16x32xf32>
      %96 = tpu.concatenate %95, %95, %95, %95, %95, %95, %95, %95 in 1 : vector<16x32xf32>, vector<16x32xf32>, vector<16x32xf32>, vector<16x32xf32>, vector<16x32xf32>, vector<16x32xf32>, vector<16x32xf32>, vector<16x32xf32> -> vector<16x256xf32>
      %97 = vector.broadcast %68 : vector<1x256xf32> to vector<16x256xf32>
      %98 = arith.subf %96, %97 : vector<16x256xf32>
      %99 = arith.mulf %98, %98 : vector<16x256xf32>
      %cst_52 = arith.constant 0.000000e+00 : f32
      %100 = vector.broadcast %cst_52 : f32 to vector<16x256xf32>
      %101 = arith.subf %100, %99 : vector<16x256xf32>
      %102 = math.exp %101 : vector<16x256xf32>
      %103 = arith.truncf %102 : vector<16x256xf32> to vector<16x256xbf16>
      %104 = arith.truncf %69 : vector<256x32xf32> to vector<256x32xbf16>
      %cst_53 = arith.constant dense<0.000000e+00> : vector<16x32xf32>
      %105 = tpu.matmul %103, %104, %cst_53 {dimension_numbers = #tpu.dot_dimension_numbers<[1], [0], [0], [1], [0, 0, 1, 1], [], []>} : vector<16x256xbf16>, vector<256x32xbf16>, vector<16x32xf32> -> vector<16x32xf32>
      %106 = arith.negf %65 : vector<16x32xf32>
      %107 = math.exp %106 : vector<16x32xf32>
      %cst_54 = arith.constant 1.000000e+00 : f32
      %108 = vector.broadcast %cst_54 : f32 to vector<16x32xf32>
      %109 = arith.addf %108, %107 : vector<16x32xf32>
      %110 = arith.divf %108, %109 : vector<16x32xf32>
      %111 = arith.mulf %65, %110 : vector<16x32xf32>
      %112 = arith.truncf %111 : vector<16x32xf32> to vector<16x32xbf16>
      %113 = arith.truncf %70 : vector<32x32xf32> to vector<32x32xbf16>
      %cst_55 = arith.constant dense<0.000000e+00> : vector<16x32xf32>
      %114 = tpu.matmul %112, %113, %cst_55 {dimension_numbers = #tpu.dot_dimension_numbers<[1], [0], [0], [1], [0, 0, 1, 1], [], []>} : vector<16x32xbf16>, vector<32x32xbf16>, vector<16x32xf32> -> vector<16x32xf32>
      %115 = arith.addf %105, %114 : vector<16x32xf32>
      %116 = vector.broadcast %71 : vector<1x32xf32> to vector<16x32xf32>
      %117 = arith.addf %115, %116 : vector<16x32xf32>
      %c0_56 = arith.constant 0 : index
      %c0_57 = arith.constant 0 : index
      %118 = vector.load %arg16[%c0_56, %c0_57] : memref<16x32xf32, #tpu.memory_space<vmem>>, vector<16x32xf32>
      tpu.vector_store %arg16[%c0_56, %c0_57], %117 {strides = array<i32>} : memref<16x32xf32, #tpu.memory_space<vmem>>, vector<16x32xf32>,
    } else {
    }
    return
  }
  func.func @transform_0(%arg0: i32, %arg1: i32) -> (i32, i32) {
    %c0_i32 = arith.constant 0 : i32
    return %arg0, %arg1 : i32, i32
  }
  func.func @transform_1(%arg0: i32, %arg1: i32) -> (i32, i32) {
    %c0_i32 = arith.constant 0 : i32
    %c0_i32_0 = arith.constant 0 : i32
    return %arg1, %c0_i32 : i32, i32
  }
  func.func @transform_2(%arg0: i32, %arg1: i32) -> (i32, i32) {
    %c0_i32 = arith.constant 0 : i32
    %c0_i32_0 = arith.constant 0 : i32
    %c0_i32_1 = arith.constant 0 : i32
    return %c0_i32, %c0_i32_0 : i32, i32
  }
  func.func @transform_3(%arg0: i32, %arg1: i32) -> (i32, i32) {
    %c0_i32 = arith.constant 0 : i32
    %c0_i32_0 = arith.constant 0 : i32
    %c0_i32_1 = arith.constant 0 : i32
    return %c0_i32, %c0_i32_0 : i32, i32
  }
  func.func @transform_4(%arg0: i32, %arg1: i32) -> (i32, i32) {
    %c0_i32 = arith.constant 0 : i32
    %c0_i32_0 = arith.constant 0 : i32
    %c0_i32_1 = arith.constant 0 : i32
    return %c0_i32, %c0_i32_0 : i32, i32
  }
  func.func @transform_5(%arg0: i32, %arg1: i32) -> (i32, i32) {
    %c0_i32 = arith.constant 0 : i32
    %c0_i32_0 = arith.constant 0 : i32
    %c0_i32_1 = arith.constant 0 : i32
    return %c0_i32, %c0_i32_0 : i32, i32
  }
  func.func @transform_6(%arg0: i32, %arg1: i32) -> (i32, i32) {
    %c0_i32 = arith.constant 0 : i32
    %c0_i32_0 = arith.constant 0 : i32
    %c0_i32_1 = arith.constant 0 : i32
    return %c0_i32, %c0_i32_0 : i32, i32
  }
  func.func @transform_7(%arg0: i32, %arg1: i32) -> (i32, i32) {
    %c0_i32 = arith.constant 0 : i32
    %c0_i32_0 = arith.constant 0 : i32
    %c0_i32_1 = arith.constant 0 : i32
    return %c0_i32, %c0_i32_0 : i32, i32
  }
  func.func @transform_8(%arg0: i32, %arg1: i32) -> (i32, i32) {
    %c0_i32 = arith.constant 0 : i32
    %c0_i32_0 = arith.constant 0 : i32
    %c0_i32_1 = arith.constant 0 : i32
    return %c0_i32, %c0_i32_0 : i32, i32
  }
  func.func @transform_9(%arg0: i32, %arg1: i32) -> (i32, i32) {
    %c0_i32 = arith.constant 0 : i32
    %c0_i32_0 = arith.constant 0 : i32
    %c0_i32_1 = arith.constant 0 : i32
    return %c0_i32, %c0_i32_0 : i32, i32
  }
  func.func @transform_10(%arg0: i32, %arg1: i32) -> (i32, i32) {
    %c0_i32 = arith.constant 0 : i32
    %c0_i32_0 = arith.constant 0 : i32
    %c0_i32_1 = arith.constant 0 : i32
    return %c0_i32, %c0_i32_0 : i32, i32
  }
  func.func @transform_11(%arg0: i32, %arg1: i32) -> (i32, i32) {
    %c0_i32 = arith.constant 0 : i32
    %c0_i32_0 = arith.constant 0 : i32
    %c0_i32_1 = arith.constant 0 : i32
    return %c0_i32, %c0_i32_0 : i32, i32
  }
  func.func @transform_12(%arg0: i32, %arg1: i32) -> (i32, i32) {
    %c0_i32 = arith.constant 0 : i32
    %c0_i32_0 = arith.constant 0 : i32
    %c0_i32_1 = arith.constant 0 : i32
    return %c0_i32, %c0_i32_0 : i32, i32
  }
  func.func @transform_13(%arg0: i32, %arg1: i32) -> (i32, i32) {
    %c0_i32 = arith.constant 0 : i32
    %c0_i32_0 = arith.constant 0 : i32
    %c0_i32_1 = arith.constant 0 : i32
    return %c0_i32, %c0_i32_0 : i32, i32
  }
  func.func @transform_14(%arg0: i32, %arg1: i32) -> (i32, i32) {
    %c0_i32 = arith.constant 0 : i32
    %c0_i32_0 = arith.constant 0 : i32
    return %arg0, %c0_i32 : i32, i32
  }
}

</mosaic_0001>

<bundles_post_ra>
// kernel: tpu_custom_call.1
= control target key start
LH: loop header
LB: loop body
LE: loop exit
PB: predicated region body
PF: predicated region fallthrough
CT: control target
= control target key end

     0   :  { %6 = vsyncpa [#allocation3], 0  ;;  %s286_s0 = inlined_call_operand.hbm [shape: f32[8,128], index: 0, kind: input, shape index: {}]   ;;  %s287_s1 = inlined_call_operand.hbm [shape: f32[8,128], index: 1, kind: output, shape index: {}]  }
   0x1   :  { %7 = vsyncpa [#allocation4], 0  ;;  %s269_s6 = smov 0  }
   0x2 LB: > { %s148_s7 = sadd.s32 4294967295, %s255_s6   ;;  %p149_p0 = scmp.ge.s32.totalorder %s255_s6, 1  ;;  %s255_s6 = sphi %s269_s6, %s13_s6  }
   0x3   : > { %p60_p1 = scmp.lt.s32.totalorder %s255_s6, 3  ;;  %s72_s10 = sshll.u32 %s286_s0, 4  ;;  %s73_s10 = int_to_ptr.hbm [resolvable:$true] %s72_s10 }
   0x4   : > { %p169_p3 = scmp.eq.s32.totalorder %s148_s7, 0  ;;  %s257_s11 = smov [#allocation2]  }
   0x5   : > { %p61_p2 = pnand %p149_p0, %p60_p1  ;;  %s74_s12 = sshll.u32 %s257_s11, 4  ;;  %s75_s12 = int_to_ptr.vmem [resolvable:$true] %s74_s12 }
   0x7   : > { %p165_p4 = pneg %p61_p2  ;;  %87 = sbr.rel (%p61_p2) target bundleno = 19 (0x13), region = 24 }
   0x9   : > { %p166_p5 = pnand %p169_p3, %p165_p4 }
   0xb   : > { %168 = dma.hbm_to_vmem [thread:$0]  (!%p166_p5), %s73_s10, 128, %s75_s12, [#allocation3]  }
   0xc   : > { %246 = dma.done.wait (%p169_p3), [#allocation3], 128  }
   0xd   : > { %248 = vsyncadd (%p169_p3), [#allocation3], 4294967168  ;;  %s258_s13 = smov [#allocation5]   ;;  %s108_s17 = sshll.u32 %s287_s1, 4  ;;  %v98_v0 = vld [vmem:[#allocation2] sm:$0xff]  ;;  %s109_s17 = int_to_ptr.hbm [resolvable:$true] %s108_s17 }
   0xe   : > { %s106_s14 = sshll.u32 %s258_s13, 4  ;;  %p171_p6 = scmp.eq.s32.totalorder %s148_s7, 1  ;;  %99 = vst [vmem:[#allocation5] sm:$0xff] %v98_v0  ;;  %s107_s14 = int_to_ptr.vmem [resolvable:$true] %s106_s14 }
  0x10   : > { %162 = dma.vmem_to_hbm [thread:$0]  (%p171_p6), %s107_s14, 128, %s109_s17, [#allocation4]  }
  0x11   : > { %250 = dma.done.wait (%p171_p6), [#allocation4], 128  }
  0x12   : > { %252 = vsyncadd (%p171_p6), [#allocation4], 4294967168 }
  0x13 PF: > { %s13_s6 = sadd.s32 1, %s255_s6  }
  0x14   : > { %p10_p7 = scmp.ge.s32.totalorder %s13_s6, 4  }
  0x16   :  { %12 = sbr.rel (!%p10_p7) target bundleno = 2 (0x2), region = 53 }
  0x1b   :  { %122 = vsyncpa [#allocation3], 1 }
  0x1c   :  { %124 = vsyncpa [#allocation3 + $0x1], 1 }
  0x1d   :  { %125 = vsyncpa [#allocation4], 1 }
  0x1e   :  { %127 = vsyncpa [#allocation4 + $0x1], 1 }

// kernel: tpu_custom_call.1
= control target key start
LH: loop header
LB: loop body
LE: loop exit
PB: predicated region body
PF: predicated region fallthrough
CT: control target
= control target key end

     0   :  { %vm53_vm0 = vcmask 31744   ;;  %v721_v4 = vmov 0.0   ;;  %vm68_vm1 = vcmask 130048   ;;  %s1013_s0 = inlined_call_operand.vmem [shape: bf16[16,16], index: 0, kind: input, shape index: {}]   ;;  %s1014_s1 = inlined_call_operand.vmem [shape: f32[16,4], index: 1, kind: input, shape index: {}]   ;;  %s1015_s2 = inlined_call_operand.vmem [shape: f32[1,4], index: 2, kind: input, shape index: {}]   ;;  %s1016_s3 = inlined_call_operand.vmem [shape: f32[1,4], index: 3, kind: input, shape index: {}]   ;;  %s1017_s4 = inlined_call_operand.vmem [shape: f32[1,32], index: 4, kind: input, shape index: {}]   ;;  %s1018_s5 = inlined_call_operand.vmem [shape: f32[32,32], index: 5, kind: input, shape index: {}]   ;;  %s1019_s6 = inlined_call_operand.vmem [shape: f32[4,32], index: 6, kind: input, shape index: {}]   ;;  %s1020_s7 = inlined_call_operand.vmem [shape: f32[1,32], index: 7, kind: input, shape index: {}]   ;;  %s1021_s8 = inlined_call_operand.vmem [shape: f32[1,32], index: 8, kind: input, shape index: {}]   ;;  %s1022_s9 = inlined_call_operand.vmem [shape: f32[1,32], index: 9, kind: input, shape index: {}]   ;;  %s1023_s10 = inlined_call_operand.vmem [shape: f32[1,256], index: 10, kind: input, shape index: {}]   ;;  %s1024_s11 = inlined_call_operand.vmem [shape: f32[256,32], index: 11, kind: input, shape index: {}]   ;;  %s1025_s12 = inlined_call_operand.vmem [shape: f32[32,32], index: 12, kind: input, shape index: {}]   ;;  %s1026_s13 = inlined_call_operand.vmem [shape: f32[1,32], index: 13, kind: input, shape index: {}]   ;;  %s1027_s14 = inlined_call_operand.hbm [shape: f32[16,32], index: 14, kind: output, shape index: {}]  }
   0x1   :  { %v60_v0 = vld [vmem:[%s1014_s1] sm:$0xff]  ;;  %v61_v1 = vld [vmem:[%s1014_s1 + $0x8] sm:$0xff]  ;;  %54 = vst.msk [vmem:[#allocation2] sm:$0xff] %vm53_vm0, %v721_v4 }
   0x2   :  { %v62_v2 = vpack.c.bf16 %v61_v1, %v60_v0  ;;  %v632_v3 = vld [vmem:[%s1013_s0] sm:$0xff]  ;;  %55 = vst.msk [vmem:[#allocation2 + $0x8] sm:$0xff] %vm53_vm0, %v721_v4 }
   0x4   :  { %79 = vmatpush.bf16.msra.mxu2 %v62_v2 }
   0x5   :  { %19 = vsyncpa [#allocation4], 0  ;;  %v103_v6 = vld [vmem:[%s1019_s6] sm:$0xf]  ;;  %vm292_vm2 = vcmask 1041408   ;;  %v722_v47 = vmov 4.0  }
   0x6   :  { %v288_v7 = vpack.c.bf16 %v103_v6, %v103_v6  ;;  %s724_s22 = smov 4   ;;  %s726_s23 = smov 12  }
   0x7   :  { %624 = vmatmul.msk.bf16.vlgmr.msra.gmra.mxu2 %vm68_vm1, %v632_v3  ;;  %s727_s24 = smov 16   ;;  %s728_s25 = smov 20  }
   0x8   :  { %v56_v5 = vld [vmem:[#allocation2] sm:$0xff]  ;;  %v294_v10 = vsel %vm292_vm2, %v288_v7, 0  ;;  %s729_s26 = smov 28   ;;  %s732_s27 = smov 32  }
   0x9   :  { %303 = vmatpush.bf16.msra.mxu3 %v294_v10  ;;  %v57_v11 = vld [vmem:[#allocation2 + $0x8] sm:$0xff]  ;;  %s734_s21 = smov [#allocation3]  }
  0x8a   :  { %v81_v8 = vpop.f32.mrf.mxu2 }
  0x8b   :  { %v86_v9 = vadd.f32 %v81_v8, %v56_v5 }
  0x8d   :  { %89 = vst.msk [vmem:[#allocation2] sm:$0xff] %vm53_vm0, %v86_v9 }
  0x92   :  { %v83_v12 = vpop.f32.mrf.mxu2 }
  0x93   :  { %v87_v13 = vadd.f32 %v83_v12, %v57_v11 }
  0x94   :  { %v94_v14 = vld [vmem:[#allocation2] sm:$0xff] }
  0x95   :  { %90 = vst.msk [vmem:[#allocation2 + $0x8] sm:$0xff] %vm53_vm0, %v87_v13  ;;  %v105_v15 = vsel %vm53_vm0, %v94_v14, 0.0  ;;  %v625_v16 = vmul.f32 -1.442695, %v94_v14 }
  0x96   :  { %106 = vadd.xlane.f32.xlu0 %v105_v15 }
  0x97   :  { %655 = vpow2.f32 %v625_v16 }
  0x9c   :  { %v95_v17 = vld [vmem:[#allocation2 + $0x8] sm:$0xff] }
  0x9d   :  { %v656_v18 = vpop.eup %655  ;;  %v108_v19 = vsel %vm53_vm0, %v95_v17, 0.0  ;;  %v626_v20 = vmul.f32 -1.442695, %v95_v17 }
  0x9e   :  { %v253_v21 = vadd.f32 1.0, %v656_v18  ;;  %109 = vadd.xlane.f32.xlu0 %v108_v19 }
  0x9f   :  { %657 = vpow2.f32 %v626_v20 }
  0xa0   :  { %659 = vrcp.f32 %v253_v21  ;;  %v266_v31 = vand.u32 2147483648, %v253_v21  ;;  %vm260_vm4 = vweird.f32 %v253_v21  ;;  %v264_v32 = vand.u32 2147483647, %v253_v21 }
  0xa2   :  { %v267_v38 = vor.u32 1.1754944e-38, %v266_v31  ;;  %vm265_vm7 = vcmp.eq.f32.partialorder %v264_v32, 8.507059e+37 }
  0xa5   :  { %v658_v22 = vpop.eup %657 }
  0xa6   :  { %v660_v23 = vpop.eup %659  ;;  %v254_v24 = vadd.f32 1.0, %v658_v22 }
  0xa7   :  { %v256_v25 = vmul.f32 %v660_v23, %v253_v21  ;;  %vm261_vm3 = vweird.f32 %v660_v23 }
  0xa8   :  { %661 = vrcp.f32 %v254_v24  ;;  %vm262_vm5 = vmor %vm260_vm4, %vm261_vm3  ;;  %v281_v34 = vand.u32 2147483648, %v254_v24  ;;  %v279_v37 = vand.u32 2147483647, %v254_v24  ;;  %vm275_vm8 = vweird.f32 %v254_v24 }
  0xa9   :  { %v257_v26 = vsub.f32 1.0, %v256_v25  ;;  %663 = vrcp.f32 %v722_v47  ;;  %vm214_vm4 = vcmask 64512  }
  0xaa   :  { %v282_v41 = vor.u32 1.1754944e-38, %v281_v34  ;;  %vm280_vm10 = vcmp.eq.f32.partialorder %v279_v37, 8.507059e+37 }
  0xab   :  { %v258_v27 = vmul.f32 %v660_v23, %v257_v26 }
  0xad   :  { %v259_v29 = vadd.f32 %v660_v23, %v258_v27 }
  0xae   :  { %v662_v28 = vpop.eup %661 }
  0xaf   :  { %v271_v30 = vmul.f32 %v662_v28, %v254_v24  ;;  %v263_v35 = vsel %vm262_vm5, %v660_v23, %v259_v29  ;;  %vm276_vm6 = vweird.f32 %v662_v28  ;;  %v664_v48 = vpop.eup %663  ;;  %vm217_vm5 = vcmask 97280  }
  0xb0   :  { %v268_v40 = vsel %vm265_vm7, %v267_v38, %v263_v35  ;;  %vm277_vm9 = vmor %vm275_vm8, %vm276_vm6  ;;  %v112_v49 = vmul.f32 4.0, %v664_v48  ;;  %vm116_vm11 = vweird.f32 %v664_v48  ;;  %v101_v35 = vld [vmem:[%s1018_s5 + $0x10] sm:$0xff]  ;;  %v99_v38 = vld [vmem:[%s1018_s5] sm:$0xff]  ;;  %vm222_vm6 = vcmask 162816  }
  0xb1   :  { %v272_v33 = vsub.f32 1.0, %v271_v30  ;;  %v285_v44 = vmul.f32 %v268_v40, %v94_v14  ;;  %vm225_vm7 = vcmask 195584   ;;  %vm228_vm8 = vcmask 228352  }
  0xb2   :  { %v113_v50 = vsub.f32 1.0, %v112_v49 }
  0xb3   :  { %v273_v36 = vmul.f32 %v662_v28, %v272_v33 }
  0xb4   :  { %v114_v51 = vmul.f32 %v664_v48, %v113_v50 }
  0xb5   :  { %v274_v39 = vadd.f32 %v662_v28, %v273_v36  ;;  %v102_v36 = vld [vmem:[%s1018_s5 + $0x18] sm:$0xff] }
  0xb6   :  { %v115_v52 = vadd.f32 %v664_v48, %v114_v51  ;;  %v246_v37 = vpack.c.bf16 %v102_v36, %v101_v35 }
  0xb7   :  { %v278_v42 = vsel %vm277_vm9, %v662_v28, %v274_v39  ;;  %v100_v39 = vld [vmem:[%s1018_s5 + $0x8] sm:$0xff] }
  0xb8   :  { %v283_v43 = vsel %vm280_vm10, %v282_v41, %v278_v42  ;;  %v117_v53 = vsel %vm116_vm11, %v664_v48, %v115_v52  ;;  %320 = vmatpush.bf16.msrb.mxu2 %v246_v37  ;;  %v245_v40 = vpack.c.bf16 %v100_v39, %v99_v38 }
  0xb9   :  { %v286_v45 = vmul.f32 %v283_v43, %v95_v17 }
  0xbb   :  { %v287_v46 = vpack.c.bf16 %v286_v45, %v285_v44 }
  0xbc   :  { %321 = vmatpush.bf16.msrb.mxu2 %v245_v40 }
  0xbd   :  { %627 = vmatmul.msk.bf16.vlgmr.msra.gmra.mxu3 %vm53_vm0, %v287_v46 }
 0x109   :  { %v107_v54 = vpop.xlane.xlu0 %106 }
 0x10a   :  { %v118_v55 = vmul.f32 %v117_v53, %v107_v54 }
 0x10c   :  { %v120_v56 = vsub.f32 %v94_v14, %v118_v55  ;;  %v648_v14 = vld [vmem:[%s1015_s2] ss:$0 sm:$0xff]  ;;  %s723_s2 = smov 8  }
 0x10d   :  { %v650_v55 = vld [vmem:[%s1017_s4] ss:$0 sm:$0xff] }
 0x10e   :  { %v122_v57 = vmul.f32 %v120_v56, %v120_v56 }
 0x110   :  { %v124_v58 = vsel %vm53_vm0, %v122_v57, 0.0 }
 0x111   :  { %125 = vadd.xlane.f32.xlu1 %v124_v58  ;;  %v110_v59 = vpop.xlane.xlu0 %109 }
 0x112   :  { %v119_v60 = vmul.f32 %v117_v53, %v110_v59 }
 0x114   :  { %v121_v61 = vsub.f32 %v95_v17, %v119_v60  ;;  %v649_v17 = vld [vmem:[%s1016_s3] ss:$0 sm:$0xff]  ;;  %s725_s3 = smov 24  }
 0x116   :  { %v123_v62 = vmul.f32 %v121_v61, %v121_v61 }
 0x118   :  { %v127_v63 = vsel %vm53_vm0, %v123_v62, 0.0 }
 0x119   :  { %128 = vadd.xlane.f32.xlu1 %v127_v63 }
 0x184   :  { %v126_v0 = vpop.xlane.xlu1 %125 }
 0x185   :  { %v130_v1 = vmul.f32 %v126_v0, %v117_v53 }
 0x187   :  { %v132_v2 = vadd.f32 1e-05, %v130_v1 }
 0x189   :  { %665 = vrsqrt.f32 %v132_v2  ;;  %vm140_vm13 = vweird.f32 %v132_v2 }
 0x18c   :  { %v129_v3 = vpop.xlane.xlu1 %128 }
 0x18d   :  { %v131_v4 = vmul.f32 %v129_v3, %v117_v53 }
 0x18f   :  { %v666_v5 = vpop.eup %665  ;;  %v133_v6 = vadd.f32 1e-05, %v131_v4 }
 0x190   :  { %v135_v7 = vmul.f32 %v666_v5, %v132_v2  ;;  %vm141_vm12 = vweird.f32 %v666_v5 }
 0x191   :  { %667 = vrsqrt.f32 %v133_v6  ;;  %vm142_vm14 = vmor %vm140_vm13, %vm141_vm12  ;;  %vm150_vm2 = vweird.f32 %v133_v6 }
 0x192   :  { %v136_v8 = vmul.f32 %v666_v5, %v135_v7 }
 0x194   :  { %v137_v9 = vmul.f32 0.5, %v136_v8 }
 0x196   :  { %v138_v10 = vsub.f32 1.5, %v137_v9 }
 0x197   :  { %v668_v11 = vpop.eup %667 }
 0x198   :  { %v139_v12 = vmul.f32 %v666_v5, %v138_v10  ;;  %v145_v13 = vmul.f32 %v668_v11, %v133_v6  ;;  %vm151_vm15 = vweird.f32 %v668_v11 }
 0x199   :  { %vm152_vm3 = vmor %vm150_vm2, %vm151_vm15 }
 0x19a   :  { %v143_v15 = vsel %vm142_vm14, %v666_v5, %v139_v12  ;;  %v146_v16 = vmul.f32 %v668_v11, %v145_v13  ;;  %v370_v12 = vld [vmem:[%s1025_s12 + $0x10] sm:$0xff]  ;;  %v371_v13 = vld [vmem:[%s1025_s12 + $0x18] sm:$0xff] }
 0x19b   :  { %v154_v18 = vmul.f32 %v143_v15, %v120_v56  ;;  %v549_v15 = vpack.c.bf16 %v371_v13, %v370_v12 }
 0x19c   :  { %v147_v19 = vmul.f32 0.5, %v146_v16  ;;  %v369_v16 = vld [vmem:[%s1025_s12 + $0x8] sm:$0xff] }
 0x19d   :  { %v159_v20 = vmul.f32 %v648_v14, %v154_v18  ;;  %559 = vmatpush.bf16.msrb.mxu3 %v549_v15  ;;  %v305_v18 = vpop.f32.mrf.mxu3 }
 0x19e   :  { %v148_v21 = vsub.f32 1.5, %v147_v19  ;;  %v651_v19 = vld [vmem:[%s1020_s7] ss:$0 sm:$0xff] }
 0x19f   :  { %v164_v22 = vadd.f32 %v649_v17, %v159_v20 }
 0x1a0   :  { %v149_v23 = vmul.f32 %v668_v11, %v148_v21 }
 0x1a1   :  { %v166_v24 = vmul.f32 1.75, %v164_v22 }
 0x1a2   :  { %v153_v25 = vsel %vm152_vm3, %v668_v11, %v149_v23 }
 0x1a3   :  { %v155_v26 = vmul.f32 %v153_v25, %v121_v61  ;;  %176 = vrot.lane.b32.xlu0 %v166_v24, %s723_s2  ;;  %170 = vrot.lane.b32.xlu2 %v166_v24, %s724_s22 }
 0x1a5   :  { %v160_v27 = vmul.f32 %v648_v14, %v155_v26  ;;  %v368_v14 = vld [vmem:[%s1025_s12] sm:$0xff]  ;;  %v307_v25 = vpop.f32.mrf.mxu3 }
 0x1a7   :  { %v165_v28 = vadd.f32 %v649_v17, %v160_v27  ;;  %v548_v17 = vpack.c.bf16 %v369_v16, %v368_v14 }
 0x1a9   :  { %v167_v29 = vmul.f32 1.75, %v165_v28  ;;  %560 = vmatpush.bf16.msrb.mxu3 %v548_v17 }
 0x1ab   :  { %200 = vrot.lane.b32.xlu0 %v166_v24, %s725_s3  ;;  %182 = vrot.lane.b32.xlu2 %v166_v24, %s726_s23 }
 0x1ac   :  { %178 = vrot.lane.b32.xlu1 %v167_v29, %s723_s2 }
 0x1b3   :  { %188 = vrot.lane.b32.xlu2 %v166_v24, %s727_s24  ;;  %190 = vrot.lane.b32.xlu0 %v167_v29, %s727_s24  ;;  %s608_s24 = sshll.u32 %s1027_s14, 4  ;;  %s609_s24 = int_to_ptr.hbm [resolvable:$true] %s608_s24 }
 0x1b4   :  { %196 = vrot.lane.b32.xlu1 %v167_v29, %s728_s25 }
 0x1bb   :  { %194 = vrot.lane.b32.xlu2 %v166_v24, %s728_s25  ;;  %208 = vrot.lane.b32.xlu0 %v167_v29, %s729_s26 }
 0x1bc   :  { %206 = vrot.lane.b32.xlu1 %v166_v24, %s729_s26 }
 0x1c3   :  { %172 = vrot.lane.b32.xlu2 %v167_v29, %s724_s22  ;;  %s606_s22 = sshll.u32 %s734_s21, 4  ;;  %s607_s22 = int_to_ptr.vmem [resolvable:$true] %s606_s22 }
 0x1cb   :  { %184 = vrot.lane.b32.xlu2 %v167_v29, %s726_s23 }
 0x1d3   :  { %202 = vrot.lane.b32.xlu2 %v167_v29, %s725_s3 }
 0x1fd   :  { %v171_v30 = vpop.permute.xlu2 %170 }
 0x1fe   :  { %v212_v44 = vsel %vm53_vm0, %v166_v24, %v171_v30 }
 0x205   :  { %v183_v31 = vpop.permute.xlu2 %182 }
 0x20d   :  { %v189_v32 = vpop.permute.xlu2 %188 }
 0x215   :  { %v195_v33 = vpop.permute.xlu2 %194  ;;  %v177_v34 = vpop.permute.xlu0 %176 }
 0x216   :  { %v215_v46 = vsel %vm214_vm4, %v212_v44, %v177_v34 }
 0x217   :  { %v218_v51 = vsel %vm217_vm5, %v215_v46, %v183_v31 }
 0x218   :  { %v220_v53 = vsel %vm68_vm1, %v218_v51, %v189_v32 }
 0x219   :  { %v223_v56 = vsel %vm222_vm6, %v220_v53, %v195_v33 }
 0x21d   :  { %v173_v41 = vpop.permute.xlu2 %172  ;;  %v201_v42 = vpop.permute.xlu0 %200 }
 0x21e   :  { %v179_v43 = vpop.permute.xlu1 %178  ;;  %v213_v45 = vsel %vm53_vm0, %v167_v29, %v173_v41  ;;  %v226_v60 = vsel %vm225_vm7, %v223_v56, %v201_v42  ;;  %vm310_vm0 = vcmask 261120  }
 0x21f   :  { %v216_v50 = vsel %vm214_vm4, %v213_v45, %v179_v43 }
 0x225   :  { %v185_v47 = vpop.permute.xlu2 %184  ;;  %v191_v48 = vpop.permute.xlu0 %190 }
 0x226   :  { %v197_v49 = vpop.permute.xlu1 %196  ;;  %v219_v52 = vsel %vm217_vm5, %v216_v50, %v185_v47 }
 0x227   :  { %v221_v54 = vsel %vm68_vm1, %v219_v52, %v191_v48 }
 0x228   :  { %v224_v58 = vsel %vm222_vm6, %v221_v54, %v197_v49 }
 0x22d   :  { %v203_v57 = vpop.permute.xlu2 %202  ;;  %v209_v59 = vpop.permute.xlu0 %208 }
 0x22e   :  { %v207_v61 = vpop.permute.xlu1 %206  ;;  %v227_v62 = vsel %vm225_vm7, %v224_v58, %v203_v57  ;;  %v730_v58 = vmov 32.0  }
 0x22f   :  { %v229_v63 = vsel %vm228_vm8, %v226_v60, %v207_v61  ;;  %v230_v0 = vsel %vm228_vm8, %v227_v62, %v209_v59 }
 0x230   :  { %v234_v1 = vsub.f32 %v229_v63, %v650_v55  ;;  %v235_v2 = vsub.f32 %v230_v0, %v650_v55 }
 0x232   :  { %v236_v3 = vmul.f32 %v234_v1, %v234_v1  ;;  %v237_v4 = vmul.f32 %v235_v2, %v235_v2 }
 0x234   :  { %v238_v5 = vsub.f32 0.0, %v236_v3  ;;  %v239_v6 = vsub.f32 0.0, %v237_v4 }
 0x236   :  { %v240_v7 = vmul.f32 1.442695, %v238_v5  ;;  %v242_v8 = vmul.f32 1.442695, %v239_v6 }
 0x238   :  { %669 = vpow2.f32 %v240_v7 }
 0x239   :  { %671 = vpow2.f32 %v242_v8 }
 0x23e   :  { %v670_v9 = vpop.eup %669 }
 0x23f   :  { %v672_v10 = vpop.eup %671 }
 0x240   :  { %v244_v11 = vpack.c.bf16 %v672_v10, %v670_v9 }
 0x242   :  { %628 = vmatmul.msk.bf16.vlgmr.msrb.gmra.mxu2 %vm310_vm0, %v244_v11 }
 0x2c5   :  { %v323_v20 = vpop.f32.mrf.mxu2 }
 0x2c6   :  { %v324_v21 = vadd.f32 %v323_v20, %v305_v18 }
 0x2c8   :  { %v331_v22 = vadd.f32 %v651_v19, %v324_v21 }
 0x2ca   :  { %v629_v23 = vmul.f32 -1.442695, %v331_v22  ;;  %v373_v24 = vsel %vm310_vm0, %v331_v22, 0.0 }
 0x2cb   :  { %374 = vadd.xlane.f32.xlu2 %v373_v24 }
 0x2cc   :  { %673 = vpow2.f32 %v629_v23 }
 0x2cd   :  { %v325_v26 = vpop.f32.mrf.mxu2 }
 0x2ce   :  { %v326_v27 = vadd.f32 %v325_v26, %v307_v25  ;;  %v652_v25 = vld [vmem:[%s1021_s8] ss:$0 sm:$0xff]  ;;  %s731_s8 = smov 64  }
 0x2d0   :  { %v332_v28 = vadd.f32 %v651_v19, %v326_v27 }
 0x2d2   :  { %v674_v29 = vpop.eup %673  ;;  %v630_v30 = vmul.f32 -1.442695, %v332_v28  ;;  %v376_v31 = vsel %vm310_vm0, %v332_v28, 0.0 }
 0x2d3   :  { %v513_v32 = vadd.f32 1.0, %v674_v29  ;;  %377 = vadd.xlane.f32.xlu1 %v376_v31  ;;  %v653_v29 = vld [vmem:[%s1022_s9] ss:$0 sm:$0xff]  ;;  %s733_s9 = smov 96  }
 0x2d4   :  { %675 = vpow2.f32 %v630_v30 }
 0x2d5   :  { %677 = vrcp.f32 %v513_v32  ;;  %v526_v42 = vand.u32 2147483648, %v513_v32  ;;  %vm520_vm9 = vweird.f32 %v513_v32  ;;  %v524_v43 = vand.u32 2147483647, %v513_v32 }
 0x2d7   :  { %v527_v49 = vor.u32 1.1754944e-38, %v526_v42  ;;  %vm525_vm12 = vcmp.eq.f32.partialorder %v524_v43, 8.507059e+37  ;;  %v351_v42 = vld [vmem:[%s1024_s11 + $0x78] sm:$0xff]  ;;  %v366_v43 = vld [vmem:[%s1024_s11 + $0xf0] sm:$0xff] }
 0x2da   :  { %v676_v33 = vpop.eup %675 }
 0x2db   :  { %v678_v34 = vpop.eup %677  ;;  %v514_v35 = vadd.f32 1.0, %v676_v33 }
 0x2dc   :  { %v516_v36 = vmul.f32 %v678_v34, %v513_v32  ;;  %vm521_vm1 = vweird.f32 %v678_v34 }
 0x2dd   :  { %679 = vrcp.f32 %v514_v35  ;;  %vm522_vm10 = vmor %vm520_vm9, %vm521_vm1  ;;  %v541_v45 = vand.u32 2147483648, %v514_v35  ;;  %v539_v48 = vand.u32 2147483647, %v514_v35  ;;  %vm535_vm13 = vweird.f32 %v514_v35 }
 0x2de   :  { %v517_v37 = vsub.f32 1.0, %v516_v36  ;;  %681 = vrcp.f32 %v730_v58  ;;  %vm458_vm1 = vcmask 523264   ;;  %vm461_vm9 = vcmask 785408  }
 0x2df   :  { %v542_v52 = vor.u32 1.1754944e-38, %v541_v45  ;;  %vm540_vm15 = vcmp.eq.f32.partialorder %v539_v48, 8.507059e+37  ;;  %v367_v45 = vld [vmem:[%s1024_s11 + $0xf8] sm:$0xff]  ;;  %v349_v48 = vld [vmem:[%s1024_s11 + $0x68] sm:$0xff] }
 0x2e0   :  { %v518_v38 = vmul.f32 %v678_v34, %v517_v37 }
 0x2e2   :  { %v519_v40 = vadd.f32 %v678_v34, %v518_v38 }
 0x2e3   :  { %v680_v39 = vpop.eup %679 }
 0x2e4   :  { %v531_v41 = vmul.f32 %v680_v39, %v514_v35  ;;  %v523_v46 = vsel %vm522_vm10, %v678_v34, %v519_v40  ;;  %vm536_vm11 = vweird.f32 %v680_v39  ;;  %v682_v59 = vpop.eup %681 }
 0x2e5   :  { %v528_v51 = vsel %vm525_vm12, %v527_v49, %v523_v46  ;;  %vm537_vm14 = vmor %vm535_vm13, %vm536_vm11  ;;  %v380_v60 = vmul.f32 32.0, %v682_v59  ;;  %vm384_vm2 = vweird.f32 %v682_v59  ;;  %v506_v46 = vpack.c.bf16 %v367_v45, %v366_v43  ;;  %v364_v49 = vld [vmem:[%s1024_s11 + $0xe0] sm:$0xff] }
 0x2e6   :  { %v532_v44 = vsub.f32 1.0, %v531_v41  ;;  %v545_v55 = vmul.f32 %v528_v51, %v331_v22  ;;  %v350_v41 = vld [vmem:[%s1024_s11 + $0x70] sm:$0xff]  ;;  %v365_v51 = vld [vmem:[%s1024_s11 + $0xe8] sm:$0xff] }
 0x2e7   :  { %v381_v61 = vsub.f32 1.0, %v380_v60  ;;  %581 = vmatpush.bf16.msra.mxu1 %v506_v46  ;;  %v345_v60 = vld [vmem:[%s1024_s11 + $0x48] sm:$0xff] }
 0x2e8   :  { %v533_v47 = vmul.f32 %v680_v39, %v532_v44  ;;  %v498_v44 = vpack.c.bf16 %v351_v42, %v350_v41 }
 0x2e9   :  { %v382_v62 = vmul.f32 %v682_v59, %v381_v61  ;;  %v360_v61 = vld [vmem:[%s1024_s11 + $0xc0] sm:$0xff] }
 0x2ea   :  { %v534_v50 = vadd.f32 %v680_v39, %v533_v47  ;;  %567 = vmatpush.bf16.msra.mxu0 %v498_v44  ;;  %v348_v47 = vld [vmem:[%s1024_s11 + $0x60] sm:$0xff] }
 0x2eb   :  { %v383_v63 = vadd.f32 %v682_v59, %v382_v62 }
 0x2ec   :  { %v538_v53 = vsel %vm537_vm14, %v680_v39, %v534_v50  ;;  %v497_v50 = vpack.c.bf16 %v349_v48, %v348_v47 }
 0x2ed   :  { %v543_v54 = vsel %vm540_vm15, %v542_v52, %v538_v53  ;;  %v385_v0 = vsel %vm384_vm2, %v682_v59, %v383_v63  ;;  %v505_v52 = vpack.c.bf16 %v365_v51, %v364_v49  ;;  %v346_v53 = vld [vmem:[%s1024_s11 + $0x50] sm:$0xff]  ;;  %v344_v59 = vld [vmem:[%s1024_s11 + $0x40] sm:$0xff]  ;;  %v361_v63 = vld [vmem:[%s1024_s11 + $0xc8] sm:$0xff] }
 0x2ee   :  { %v546_v56 = vmul.f32 %v543_v54, %v332_v28  ;;  %568 = vmatpush.bf16.msra.mxu0 %v497_v50  ;;  %v347_v54 = vld [vmem:[%s1024_s11 + $0x58] sm:$0xff]  ;;  %v495_v62 = vpack.c.bf16 %v345_v60, %v344_v59 }
 0x2ef   :  { %582 = vmatpush.bf16.msra.mxu1 %v505_v52 }
 0x2f0   :  { %v547_v57 = vpack.c.bf16 %v546_v56, %v545_v55  ;;  %v362_v55 = vld [vmem:[%s1024_s11 + $0xd0] sm:$0xff]  ;;  %v496_v56 = vpack.c.bf16 %v347_v54, %v346_v53 }
 0x2f2   :  { %631 = vmatmul.msk.bf16.vlgmr.msrb.gmra.mxu3 %vm310_vm0, %v547_v57  ;;  %v363_v57 = vld [vmem:[%s1024_s11 + $0xd8] sm:$0xff]  ;;  %569 = vmatpush.bf16.msra.mxu0 %v496_v56 }
 0x2f3   :  { %v504_v58 = vpack.c.bf16 %v363_v57, %v362_v55 }
 0x2f5   :  { %583 = vmatpush.bf16.msra.mxu1 %v504_v58 }
 0x2f6   :  { %570 = vmatpush.bf16.msra.mxu0 %v495_v62 }
 0x33e   :  { %v375_v1 = vpop.xlane.xlu2 %374 }
 0x33f   :  { %v386_v2 = vmul.f32 %v385_v0, %v375_v1  ;;  %v342_v1 = vld [vmem:[%s1024_s11 + $0x30] sm:$0xff] }
 0x341   :  { %v388_v3 = vsub.f32 %v331_v22, %v386_v2  ;;  %v343_v2 = vld [vmem:[%s1024_s11 + $0x38] sm:$0xff] }
 0x343   :  { %v390_v4 = vmul.f32 %v388_v3, %v388_v3 }
 0x345   :  { %v392_v5 = vsel %vm310_vm0, %v390_v4, 0.0  ;;  %v494_v4 = vpack.c.bf16 %v343_v2, %v342_v1  ;;  %v654_v2 = vld [vmem:[%s1026_s13] ss:$0 sm:$0xff]  ;;  %s735_s13 = smov 128  }
 0x346   :  { %v378_v6 = vpop.xlane.xlu1 %377  ;;  %393 = vadd.xlane.f32.xlu0 %v392_v5  ;;  %v359_v5 = vld [vmem:[%s1024_s11 + $0xb8] sm:$0xff] }
 0x347   :  { %v387_v7 = vmul.f32 %v385_v0, %v378_v6  ;;  %571 = vmatpush.bf16.msra.mxu0 %v494_v4 }
 0x349   :  { %v389_v8 = vsub.f32 %v332_v28, %v387_v7  ;;  %v340_v7 = vld [vmem:[%s1024_s11 + $0x20] sm:$0xff] }
 0x34b   :  { %v391_v9 = vmul.f32 %v389_v8, %v389_v8 }
 0x34d   :  { %v395_v10 = vsel %vm310_vm0, %v391_v9, 0.0  ;;  %v356_v9 = vld [vmem:[%s1024_s11 + $0xa0] sm:$0xff] }
 0x34e   :  { %396 = vadd.xlane.f32.xlu2 %v395_v10 }
 0x375   :  { %v562_v62 = vpop.f32.mrf.mxu3 }
 0x3b9   :  { %v394_v11 = vpop.xlane.xlu0 %393 }
 0x3ba   :  { %v398_v12 = vmul.f32 %v394_v11, %v385_v0  ;;  %v357_v11 = vld [vmem:[%s1024_s11 + $0xa8] sm:$0xff] }
 0x3bc   :  { %v400_v13 = vadd.f32 1e-05, %v398_v12  ;;  %v501_v12 = vpack.c.bf16 %v357_v11, %v356_v9 }
 0x3be   :  { %683 = vrsqrt.f32 %v400_v13  ;;  %vm408_vm4 = vweird.f32 %v400_v13 }
 0x3c1   :  { %v397_v14 = vpop.xlane.xlu2 %396 }
 0x3c2   :  { %v399_v15 = vmul.f32 %v397_v14, %v385_v0  ;;  %v503_v0 = vpack.c.bf16 %v361_v63, %v360_v61  ;;  %v339_v14 = vld [vmem:[%s1024_s11 + $0x18] sm:$0xff] }
 0x3c4   :  { %v684_v16 = vpop.eup %683  ;;  %v401_v17 = vadd.f32 1e-05, %v399_v15  ;;  %584 = vmatpush.bf16.msra.mxu1 %v503_v0  ;;  %v354_v15 = vld [vmem:[%s1024_s11 + $0x90] sm:$0xff] }
 0x3c5   :  { %v403_v18 = vmul.f32 %v684_v16, %v400_v13  ;;  %vm409_vm3 = vweird.f32 %v684_v16  ;;  %v338_v13 = vld [vmem:[%s1024_s11 + $0x10] sm:$0xff] }
 0x3c6   :  { %685 = vrsqrt.f32 %v401_v17  ;;  %vm410_vm5 = vmor %vm408_vm4, %vm409_vm3  ;;  %vm418_vm7 = vweird.f32 %v401_v17 }
 0x3c7   :  { %v404_v19 = vmul.f32 %v684_v16, %v403_v18  ;;  %v336_v18 = vld [vmem:[%s1024_s11] sm:$0xff] }
 0x3c9   :  { %v405_v20 = vmul.f32 0.5, %v404_v19  ;;  %v337_v19 = vld [vmem:[%s1024_s11 + $0x8] sm:$0xff] }
 0x3cb   :  { %v406_v21 = vsub.f32 1.5, %v405_v20 }
 0x3cc   :  { %v686_v22 = vpop.eup %685 }
 0x3cd   :  { %v407_v23 = vmul.f32 %v684_v16, %v406_v21  ;;  %v413_v24 = vmul.f32 %v686_v22, %v401_v17  ;;  %vm419_vm6 = vweird.f32 %v686_v22  ;;  %v355_v17 = vld [vmem:[%s1024_s11 + $0x98] sm:$0xff]  ;;  %v352_v21 = vld [vmem:[%s1024_s11 + $0x80] sm:$0xff] }
 0x3ce   :  { %vm420_vm8 = vmor %vm418_vm7, %vm419_vm6  ;;  %v500_v20 = vpack.c.bf16 %v355_v17, %v354_v15 }
 0x3cf   :  { %v411_v26 = vsel %vm410_vm5, %v684_v16, %v407_v23  ;;  %v414_v27 = vmul.f32 %v686_v22, %v413_v24  ;;  %v492_v16 = vpack.c.bf16 %v339_v14, %v338_v13  ;;  %v491_v23 = vpack.c.bf16 %v337_v19, %v336_v18 }
 0x3d0   :  { %v422_v28 = vmul.f32 %v411_v26, %v388_v3  ;;  %v358_v3 = vld [vmem:[%s1024_s11 + $0xb0] sm:$0xff]  ;;  %v335_v26 = vld [vmem:[%s1023_s10] sm:$0x3] }
 0x3d1   :  { %v415_v30 = vmul.f32 0.5, %v414_v27  ;;  %v502_v6 = vpack.c.bf16 %v359_v5, %v358_v3  ;;  %v564_v5 = vpop.f32.mrf.mxu3 }
 0x3d2   :  { %v427_v31 = vmul.f32 %v652_v25, %v422_v28  ;;  %v465_v28 = vperm.slane %v335_v26, 0 }
 0x3d3   :  { %v416_v32 = vsub.f32 1.5, %v415_v30  ;;  %585 = vmatpush.bf16.msra.mxu1 %v502_v6  ;;  %v466_v30 = vperm.slane %v335_v26, 1 }
 0x3d4   :  { %v432_v33 = vadd.f32 %v653_v29, %v427_v31 }
 0x3d5   :  { %v417_v34 = vmul.f32 %v686_v22, %v416_v32 }
 0x3d6   :  { %v887_v35 = vmul.f32 1.75, %v432_v33 }
 0x3d7   :  { %v421_v36 = vsel %vm420_vm8, %v686_v22, %v417_v34  ;;  %586 = vmatpush.bf16.msra.mxu1 %v501_v12  ;;  %v353_v22 = vld [vmem:[%s1024_s11 + $0x88] sm:$0xff] }
 0x3d8   :  { %v423_v37 = vmul.f32 %v421_v36, %v389_v8  ;;  %444 = vrot.lane.b32.xlu2 %v887_v35, %s731_s8  ;;  %438 = vrot.lane.b32.xlu1 %v887_v35, %s732_s27  ;;  %v341_v8 = vld [vmem:[%s1024_s11 + $0x28] sm:$0xff] }
 0x3d9   :  { %v493_v10 = vpack.c.bf16 %v341_v8, %v340_v7 }
 0x3da   :  { %v428_v38 = vmul.f32 %v652_v25, %v423_v37  ;;  %v499_v25 = vpack.c.bf16 %v353_v22, %v352_v21 }
 0x3db   :  { %572 = vmatpush.bf16.msra.mxu0 %v493_v10  ;;  %587 = vmatpush.bf16.msra.mxu1 %v500_v20 }
 0x3dc   :  { %v433_v39 = vadd.f32 %v653_v29, %v428_v38 }
 0x3de   :  { %v891_v40 = vmul.f32 1.75, %v433_v39 }
 0x3df   :  { %573 = vmatpush.bf16.msra.mxu0 %v492_v16  ;;  %588 = vmatpush.bf16.msra.mxu1 %v499_v25 }
 0x3e0   :  { %450 = vrot.lane.b32.xlu1 %v887_v35, %s733_s9  ;;  %452 = vrot.lane.b32.xlu2 %v891_v40, %s733_s9 }
 0x3e1   :  { %440 = vrot.lane.b32.xlu0 %v891_v40, %s732_s27 }
 0x3e3   :  { %574 = vmatpush.bf16.msra.mxu0 %v491_v23 }
 0x3e9   :  { %446 = vrot.lane.b32.xlu0 %v891_v40, %s731_s8 }
 0x432   :  { %v445_v29 = vpop.permute.xlu2 %444 }
 0x44a   :  { %v439_v24 = vpop.permute.xlu1 %438 }
 0x44b   :  { %v456_v27 = vsel %vm310_vm0, %v887_v35, %v439_v24  ;;  %v453_v35 = vpop.permute.xlu2 %452 }
 0x44c   :  { %v459_v32 = vsel %vm458_vm1, %v456_v27, %v445_v29 }
 0x452   :  { %v451_v31 = vpop.permute.xlu1 %450 }
 0x453   :  { %v462_v33 = vsel %vm461_vm9, %v459_v32, %v451_v31  ;;  %v441_v34 = vpop.permute.xlu0 %440 }
 0x454   :  { %v469_v36 = vsub.f32 %v462_v33, %v465_v28  ;;  %v470_v37 = vsub.f32 %v462_v33, %v466_v30  ;;  %v457_v41 = vsel %vm310_vm0, %v891_v40, %v441_v34 }
 0x456   :  { %v473_v38 = vmul.f32 %v469_v36, %v469_v36  ;;  %v474_v39 = vmul.f32 %v470_v37, %v470_v37 }
 0x458   :  { %v477_v43 = vsub.f32 0.0, %v473_v38  ;;  %v478_v45 = vsub.f32 0.0, %v474_v39 }
 0x45a   :  { %v481_v49 = vmul.f32 1.442695, %v477_v43  ;;  %v483_v52 = vmul.f32 1.442695, %v478_v45 }
 0x45b   :  { %v447_v42 = vpop.permute.xlu0 %446 }
 0x45c   :  { %v460_v44 = vsel %vm458_vm1, %v457_v41, %v447_v42  ;;  %687 = vpow2.f32 %v481_v49 }
 0x45d   :  { %v463_v46 = vsel %vm461_vm9, %v460_v44, %v453_v35  ;;  %689 = vpow2.f32 %v483_v52 }
 0x45e   :  { %v471_v47 = vsub.f32 %v463_v46, %v465_v28  ;;  %v472_v48 = vsub.f32 %v463_v46, %v466_v30 }
 0x460   :  { %v475_v50 = vmul.f32 %v471_v47, %v471_v47  ;;  %v476_v51 = vmul.f32 %v472_v48, %v472_v48 }
 0x462   :  { %v479_v53 = vsub.f32 0.0, %v475_v50  ;;  %v480_v54 = vsub.f32 0.0, %v476_v51  ;;  %v688_v40 = vpop.eup %687 }
 0x463   :  { %v690_v57 = vpop.eup %689 }
 0x464   :  { %v485_v55 = vmul.f32 1.442695, %v479_v53  ;;  %v487_v56 = vmul.f32 1.442695, %v480_v54 }
 0x466   :  { %691 = vpow2.f32 %v485_v55 }
 0x467   :  { %693 = vpow2.f32 %v487_v56 }
 0x46c   :  { %v692_v58 = vpop.eup %691 }
 0x46d   :  { %v694_v59 = vpop.eup %693  ;;  %v489_v60 = vpack.c.bf16 %v692_v58, %v688_v40 }
 0x46e   :  { %v490_v61 = vpack.c.bf16 %v694_v59, %v690_v57 }
 0x46f   :  { %575 = vmatmul.bf16.vlgmr.msra.gmra.mxu0 %v489_v60 }
 0x470   :  { %589 = vmatmul.bf16.vlgmr.msra.gmra.mxu1 %v490_v61 }
 0x4ec   :  { %v576_v63 = vpop.f32.mrf.mxu0 }
 0x4ed   :  { %v577_v0 = vadd.f32 %v576_v63, %v562_v62  ;;  %v590_v1 = vpop.f32.mrf.mxu1 }
 0x4ef   :  { %v591_v3 = vadd.f32 %v590_v1, %v577_v0 }
 0x4f1   :  { %v598_v4 = vadd.f32 %v654_v2, %v591_v3 }
 0x4f3   :  { %600 = vst.msk [vmem:[#allocation3] sm:$0xff] %vm310_vm0, %v598_v4 }
 0x4f4   :  { %v578_v6 = vpop.f32.mrf.mxu0 }
 0x4f5   :  { %v579_v7 = vadd.f32 %v578_v6, %v564_v5  ;;  %v592_v8 = vpop.f32.mrf.mxu1 }
 0x4f7   :  { %v593_v9 = vadd.f32 %v592_v8, %v579_v7 }
 0x4f9   :  { %v599_v10 = vadd.f32 %v654_v2, %v593_v9 }
 0x4fb   :  { %601 = vst.msk [vmem:[#allocation3 + $0x8] sm:$0xff] %vm310_vm0, %v599_v10 }
 0x4fc   :  { %614 = dma.vmem_to_hbm [thread:$0]  %s607_s22, 256, %s609_s24, [#allocation4], %s735_s13, %s735_s13, %s723_s2  }
 0x4fd   :  { %719 = dma.done.wait [#allocation4], 256  }
 0x4fe   :  { %720 = vsyncadd [#allocation4], 4294967040 }
 0x4ff   :  { %619 = vsyncpa [#allocation4], 1 }

</bundles_post_ra>
